<compile_context>
chip_gen: v6e
topology: v6e:2x2x1
jax: 0.10.0
libtpu: 0.0.40
codegen_flags: <defaults>
</compile_context>

<pallas_src>
import jax
import jax.numpy as jnp
from jax.experimental import pallas as pl
from jax.experimental.pallas import tpu as pltpu


def _dwconv1d_kernel(x_ref, w_ref, b_ref, o_ref):
    """Depthwise 1-D conv for one (batch, channel-tile) block.

    x_ref : (1, N_pad, Ct)  padded input, channels-last
    w_ref : (K, Ct)         per-channel taps
    b_ref : (1, Ct)         per-channel bias
    o_ref : (1, N_out, Ct)  output
    """
    k_taps = w_ref.shape[0]
    n_out = o_ref.shape[1]
    c_t = o_ref.shape[2]

    acc = jnp.zeros((n_out, c_t), jnp.float32)
    # K is small and static -> unrolled; each tap is one shifted VPU FMA pass.
    for k in range(k_taps):
        x_k = x_ref[0, pl.ds(k, n_out), :].astype(jnp.float32)   # (n_out, Ct)
        w_k = w_ref[pl.ds(k, 1), :].astype(jnp.float32)          # (1, Ct) bcast
        acc = acc + x_k * w_k
    acc = acc + b_ref[...].astype(jnp.float32)
    o_ref[0] = acc.astype(o_ref.dtype)


def depthwise_conv1d(x, weight, bias, padding, mask=None):
    """DepthWiseConv1d.forward.

    x      : (B, C, N)   torch Conv1d layout
    weight : (C, K)      torch conv weight (C, 1, K) squeezed
    bias   : (C,)
    padding: (pad_left, pad_right) on the time axis
    mask   : optional (B, N) bool
    returns: (B, C, N_out), N_out = N + pad_l + pad_r - K + 1
    """
    B, C, N = x.shape
    K = weight.shape[1]
    pad_l, pad_r = padding

    # TODO(synk): mask is applied in the wrapper (plain JAX elementwise select),
    # not fused into the kernel.
    if mask is not None:
        x = jnp.where(mask[:, None, :], x, jnp.zeros((), x.dtype))

    # channels-last so channels map to the 128-wide lane axis.
    xt = jnp.transpose(x, (0, 2, 1))                         # (B, N, C)
    xt = jnp.pad(xt, ((0, 0), (pad_l, pad_r), (0, 0)))
    n_pad = N + pad_l + pad_r
    n_out = n_pad - K + 1

    # Lane-dense channel tiling: 128-wide tiles when C allows, else full C
    # (a block equal to the full array dim satisfies the (8,128) rule).
    c_t = 128 if C % 128 == 0 else C
    n_ct = C // c_t

    w2 = jnp.transpose(weight, (1, 0))                       # (K, C)
    b2 = bias.reshape(1, C)

    x_bytes = jnp.dtype(x.dtype).itemsize
    w_bytes = jnp.dtype(weight.dtype).itemsize
    cost = pl.CostEstimate(
        flops=2 * B * n_out * C * K,
        transcendentals=0,
        bytes_accessed=(B * n_pad * C + B * n_out * C) * x_bytes
        + (K * C + C) * w_bytes,
    )

    out = pl.pallas_call(
        _dwconv1d_kernel,
        out_shape=jax.ShapeDtypeStruct((B, n_out, C), x.dtype),
        grid_spec=pltpu.PrefetchScalarGridSpec(
            num_scalar_prefetch=0,
            grid=(B, n_ct),
            in_specs=[
                pl.BlockSpec((1, n_pad, c_t), lambda b, j: (b, 0, j)),  # x
                pl.BlockSpec((K, c_t), lambda b, j: (0, j)),            # taps
                pl.BlockSpec((1, c_t), lambda b, j: (0, j)),            # bias
            ],
            out_specs=pl.BlockSpec((1, n_out, c_t), lambda b, j: (b, 0, j)),
        ),
        compiler_params=pltpu.CompilerParams(
            dimension_semantics=("parallel", "parallel")),
        cost_estimate=cost,
    )(xt, w2, b2)

    out = jnp.transpose(out, (0, 2, 1))                      # (B, C, N_out)
    if mask is not None:
        out = jnp.where(mask[:, None, :], out, jnp.zeros((), out.dtype))
    return out


def depthwise_conv1d_ref(x, weight, bias, padding, mask=None):
    """Pure-JAX reference mirroring torch Conv1d(groups=C) (cross-correlation)."""
    B, C, N = x.shape
    K = weight.shape[1]
    pad_l, pad_r = padding
    xf = x.astype(jnp.float32)
    if mask is not None:
        xf = jnp.where(mask[:, None, :], xf, 0.0)
    xp = jnp.pad(xf, ((0, 0), (0, 0), (pad_l, pad_r)))
    n_out = N + pad_l + pad_r - K + 1
    out = jnp.zeros((B, C, n_out), jnp.float32)
    for k in range(K):
        out = out + xp[:, :, k:k + n_out] * weight[:, k].astype(jnp.float32)[None, :, None]
    out = out + bias.astype(jnp.float32)[None, :, None]
    if mask is not None:
        out = jnp.where(mask[:, None, :], out, 0.0)
    return out.astype(x.dtype)


if __name__ == "__main__":
    key = jax.random.PRNGKey(0)
    B, C, N, K = 2, 32, 16, 3
    padding = (K - 1, 0)   # causal, length-preserving (as used in the conformer block)

    k_x, k_w, k_b = jax.random.split(key, 3)
    x = jax.random.normal(k_x, (B, C, N), dtype=jnp.float32)
    # nn.Conv1d(C, C, K, groups=C) weight (C,1,K) -> stored as (C,K); synthetic init.
    weight = jax.random.normal(k_w, (C, K), dtype=jnp.float32) / jnp.sqrt(jnp.float32(K))
    bias = jax.random.normal(k_b, (C,), dtype=jnp.float32) * 0.01

    # mask=None path
    out = jax.block_until_ready(depthwise_conv1d(x, weight, bias, padding))
    ref = depthwise_conv1d_ref(x, weight, bias, padding)
    assert out.shape == (B, C, N), out.shape
    assert jnp.allclose(out, ref, atol=1e-5, rtol=1e-5), (
        f"max err {jnp.max(jnp.abs(out - ref))}")

    # masked path (same semantics as torch masked_fill before/after conv)
    lengths = jnp.array([16, 12])
    mask = jnp.arange(N)[None, :] < lengths[:, None]
    out_m = jax.block_until_ready(depthwise_conv1d(x, weight, bias, padding, mask=mask))
    ref_m = depthwise_conv1d_ref(x, weight, bias, padding, mask=mask)
    assert jnp.allclose(out_m, ref_m, atol=1e-5, rtol=1e-5), (
        f"max err {jnp.max(jnp.abs(out_m - ref_m))}")

    print("KERNEL_OK")
</pallas_src>

<mosaic_0001>
module attributes {stable_mosaic.version = 11 : i64} {
  func.func @_dwconv1d_kernel(%arg0: i32, %arg1: i32, %arg2: memref<1x18x32xf32, #tpu.memory_space<vmem>>, %arg3: memref<3x32xf32, #tpu.memory_space<vmem>>, %arg4: memref<1x32xf32, #tpu.memory_space<vmem>>, %arg5: memref<1x16x32xf32, #tpu.memory_space<vmem>>) attributes {dimension_semantics = [#tpu.dimension_semantics<parallel>, #tpu.dimension_semantics<parallel>], iteration_bounds = array<i64: 2, 1>, scalar_prefetch = 0 : i64, scratch_operands = 0 : i64, tpu.core_type = #tpu.core_type<tc>, window_params = [{transform_indices = @transform_0, window_bounds = array<i64: 1, 18, 32>}, {transform_indices = @transform_1, window_bounds = array<i64: 3, 32>}, {transform_indices = @transform_2, window_bounds = array<i64: 1, 32>}, {transform_indices = @transform_3, window_bounds = array<i64: 1, 16, 32>}]} {
    %cst = arith.constant 0.000000e+00 : f32
    %0 = vector.broadcast %cst : f32 to vector<16x32xf32>
    %c0 = arith.constant 0 : index
    %c0_0 = arith.constant 0 : index
    %c0_1 = arith.constant 0 : index
    %1 = vector.load %arg2[%c0, %c0_0, %c0_1] : memref<1x18x32xf32, #tpu.memory_space<vmem>>, vector<1x16x32xf32>
    %2 = vector.shape_cast %1 : vector<1x16x32xf32> to vector<16x32xf32>
    %c0_2 = arith.constant 0 : index
    %c0_3 = arith.constant 0 : index
    %3 = vector.load %arg3[%c0_2, %c0_3] : memref<3x32xf32, #tpu.memory_space<vmem>>, vector<1x32xf32>
    %4 = vector.broadcast %3 : vector<1x32xf32> to vector<16x32xf32>
    %5 = arith.mulf %2, %4 : vector<16x32xf32>
    %6 = arith.addf %0, %5 : vector<16x32xf32>
    %c0_4 = arith.constant 0 : index
    %c1 = arith.constant 1 : index
    %c0_5 = arith.constant 0 : index
    %7 = vector.load %arg2[%c0_4, %c1, %c0_5] : memref<1x18x32xf32, #tpu.memory_space<vmem>>, vector<1x16x32xf32>
    %8 = vector.shape_cast %7 : vector<1x16x32xf32> to vector<16x32xf32>
    %c1_6 = arith.constant 1 : index
    %c0_7 = arith.constant 0 : index
    %9 = vector.load %arg3[%c1_6, %c0_7] : memref<3x32xf32, #tpu.memory_space<vmem>>, vector<1x32xf32>
    %10 = vector.broadcast %9 : vector<1x32xf32> to vector<16x32xf32>
    %11 = arith.mulf %8, %10 : vector<16x32xf32>
    %12 = arith.addf %6, %11 : vector<16x32xf32>
    %c0_8 = arith.constant 0 : index
    %c2 = arith.constant 2 : index
    %c0_9 = arith.constant 0 : index
    %13 = vector.load %arg2[%c0_8, %c2, %c0_9] : memref<1x18x32xf32, #tpu.memory_space<vmem>>, vector<1x16x32xf32>
    %14 = vector.shape_cast %13 : vector<1x16x32xf32> to vector<16x32xf32>
    %c2_10 = arith.constant 2 : index
    %c0_11 = arith.constant 0 : index
    %15 = vector.load %arg3[%c2_10, %c0_11] : memref<3x32xf32, #tpu.memory_space<vmem>>, vector<1x32xf32>
    %16 = vector.broadcast %15 : vector<1x32xf32> to vector<16x32xf32>
    %17 = arith.mulf %14, %16 : vector<16x32xf32>
    %18 = arith.addf %12, %17 : vector<16x32xf32>
    %c0_12 = arith.constant 0 : index
    %c0_13 = arith.constant 0 : index
    %19 = vector.load %arg4[%c0_12, %c0_13] : memref<1x32xf32, #tpu.memory_space<vmem>>, vector<1x32xf32>
    %20 = vector.broadcast %19 : vector<1x32xf32> to vector<16x32xf32>
    %21 = arith.addf %18, %20 : vector<16x32xf32>
    %c0_14 = arith.constant 0 : index
    %c0_15 = arith.constant 0 : index
    %c0_16 = arith.constant 0 : index
    %22 = vector.load %arg5[%c0_14, %c0_15, %c0_16] : memref<1x16x32xf32, #tpu.memory_space<vmem>>, vector<1x16x32xf32>
    %23 = vector.shape_cast %22 : vector<1x16x32xf32> to vector<16x32xf32>
    %24 = vector.shape_cast %21 : vector<16x32xf32> to vector<1x16x32xf32>
    tpu.vector_store %arg5[%c0_14, %c0_15, %c0_16], %24 {strides = array<i32>} : memref<1x16x32xf32, #tpu.memory_space<vmem>>, vector<1x16x32xf32>,
    return
  }
  func.func @transform_0(%arg0: i32, %arg1: i32) -> (i32, i32, i32) {
    %c0_i32 = arith.constant 0 : i32
    %c0_i32_0 = arith.constant 0 : i32
    return %arg0, %c0_i32, %arg1 : i32, i32, i32
  }
  func.func @transform_1(%arg0: i32, %arg1: i32) -> (i32, i32) {
    %c0_i32 = arith.constant 0 : i32
    %c0_i32_0 = arith.constant 0 : i32
    return %c0_i32, %arg1 : i32, i32
  }
  func.func @transform_2(%arg0: i32, %arg1: i32) -> (i32, i32) {
    %c0_i32 = arith.constant 0 : i32
    %c0_i32_0 = arith.constant 0 : i32
    return %c0_i32, %arg1 : i32, i32
  }
  func.func @transform_3(%arg0: i32, %arg1: i32) -> (i32, i32, i32) {
    %c0_i32 = arith.constant 0 : i32
    %c0_i32_0 = arith.constant 0 : i32
    return %arg0, %c0_i32, %arg1 : i32, i32, i32
  }
}

</mosaic_0001>

<bundles_post_ra>
// kernel: tpu_custom_call.1
= control target key start
LH: loop header
LB: loop body
LE: loop exit
PB: predicated region body
PF: predicated region fallthrough
CT: control target
= control target key end

     0   :  { %8 = vsyncpa [#allocation3], 0  ;;  %s698_s0 = inlined_call_operand.vmem [shape: f32[2,18,32], index: 0, kind: input, shape index: {}]   ;;  %s699_s1 = inlined_call_operand.vmem [shape: f32[3,32], index: 1, kind: input, shape index: {}]   ;;  %s700_s2 = inlined_call_operand.vmem [shape: f32[1,32], index: 2, kind: input, shape index: {}]   ;;  %s701_s3 = inlined_call_operand.hbm [shape: f32[2,16,32], index: 3, kind: output, shape index: {}]  }
   0x1   :  { %10 = vsyncpa [#allocation3 + $0x1], 0  ;;  %s568_s12 = smov 0   ;;  %s570_s13 = smov 0  }
   0x2   :  { %s572_s14 = smov 0   ;;  %s574_s15 = smov 0  }
   0x3   :  { %s576_s16 = smov 0   ;;  %s578_s17 = smov 0  }
   0x4 LB: > { %s390_s18 = sadd.s32 4294967295, %s543_s17   ;;  %s391_s19 = sadd.s32 4294967294, %s543_s17   ;;  %s543_s17 = sphi %s578_s17, %s16_s17   ;;  %s539_s16 = sphi %s576_s16, %s708_s16   ;;  %s535_s15 = sphi %s574_s15, %s707_s15   ;;  %s531_s14 = sphi %s572_s14, %s706_s14   ;;  %s527_s13 = sphi %s570_s13, %s705_s13   ;;  %s523_s12 = sphi %s568_s12, %s704_s12  }
   0x5   : > { %s28_s20 = sadd.s32 1, %s539_s16  ;;  %s117_s21 = sadd.s32 1, %s531_s14 }
   0x6   : > { %p30_p0 = scmp.ge.s32.totalorder %s28_s20, 2  ;;  %p127_p1 = scmp.ne.s32.totalorder %s531_s14, %s527_s13 }
   0x7   : > { %p128_p2 = scmp.eq.s32.totalorder %s390_s18, 1  ;;  %p133_p3 = scmp.ne.s32.totalorder %s527_s13, %s523_s12 }
   0x8   : > { %s710_s20 = smov (%p30_p0, %s28_s20), 0  ;;  %p134_p5 = scmp.eq.s32.totalorder %s391_s19, 1 }
   0x9   : > { %p608_p4 = por %p128_p2, %p127_p1  ;;  %s112_s23 = ssub.s32 %s539_s16, %s710_s20 }
   0xa   : > { %p396_p6 = scmp.ge.s32.totalorder %s543_s17, 1  ;;  %p115_p7 = scmp.eq.s32.totalorder %s112_s23, 0 }
   0xb   : > { %p615_p8 = por %p134_p5, %p133_p3  ;;  %p176_p9 = scmp.lt.s32.totalorder %s543_s17, 3 }
   0xc   : > { %s621_s25 = scalar_select %p115_p7, %s531_s14, %s117_s21  }
   0xd   : > { %p177_p10 = pnand %p396_p6, %p176_p9 }
   0xe   : > { %p210_p11 = scmp.lt.s32.totalorder (!%p177_p10), %s535_s15, 1  ;;  %s207_s26 = sand.u32 (!%p177_p10), 1, %s527_s13  }
   0xf   : > { %180 = sbr.rel (%p177_p10) target bundleno = 49 (0x31), region = 32  ;;  %s397_s4 = sshll.u32 (!%p177_p10), %s207_s26, 4 }
  0x10   : > { %s209_s21 = scalar_lea.vmem (!%p177_p10), [#allocation2], %s397_s4  ;;  %s653_s4 = scalar_lea.sflag (!%p177_p10), [#allocation3], %s207_s26 }
  0x11   : > { %s285_s23 = sshll.u32 (!%p177_p10), %s209_s21, 4  ;;  %s545_s5 = smov (!%p177_p10), [#allocation2]   ;;  %s644_s23 = int_to_ptr.vmem [resolvable:$true] %s285_s23 }
  0x12   : > { %s471_s6 = sshll.u32 (!%p177_p10), %s545_s5, 4  ;;  %s472_s6 = int_to_ptr.vmem [resolvable:$false] %s471_s6 }
  0x13   : > { %s473_s7 = scalar_lea.vmem (!%p177_p10), %s472_s6, 512  ;;  %p474_p1 = scmp.lt.s32.totalorder (!%p177_p10), %s644_s23, %s472_s6 }
  0x14   : > { %s211_s27 = scalar_select %p210_p11, %s535_s15, 1  ;;  %v399_v0 = vld [vmem:[%s699_s1] ss:$0 sm:$0xff]  ;;  %v400_v1 = vld [vmem:[%s699_s1 + $0x1] ss:$0 sm:$0xff]  ;;  %vm267_vm0 = vcmask 261120  }
  0x15   : > { %v401_v2 = vld [vmem:[%s699_s1 + $0x2] ss:$0 sm:$0xff]  ;;  %v402_v16 = vld [vmem:[%s700_s2] ss:$0 sm:$0xff] }
  0x16   : > { %s409_s28 = smul.u32 24, %s211_s27  ;;  %s408_s27 = sshll.u32 %s535_s15, 8 }
  0x17   : > { %s649_s30 = scalar_lea.hbm %s701_s3, %s408_s27  ;;  %s467_s15 = scalar_lea.vmem %s644_s23, 256 }
  0x18   : > { %s217_s11 = scalar_lea.vmem %s698_s0, %s409_s28  ;;  %p468_p12 = scmp.ne.s32.totalorder %s644_s23, %s467_s15 }
  0x19   : > { %v225_v3 = vld [vmem:[%s217_s11] sm:$0xff]  ;;  %v226_v9 = vld [vmem:[%s217_s11 + $0x8] sm:$0xff]  ;;  %p475_p2 = scmp.lt.s32.totalorder %s473_s7, %s467_s15 }
  0x1a   : > { %v236_v4 = vld [vmem:[%s217_s11 + $0x1] sm:$0xff]  ;;  %v232_v6 = vmul.f32 %v399_v0, %v225_v3  ;;  %v237_v10 = vld [vmem:[%s217_s11 + $0x9] sm:$0xff]  ;;  %v233_v12 = vmul.f32 %v399_v0, %v226_v9  ;;  %p469_p13 = pnand %p468_p12, %p608_p4 }
  0x1b   : > { %v247_v5 = vld [vmem:[%s217_s11 + $0x2] sm:$0xff]  ;;  %v243_v7 = vmul.f32 %v400_v1, %v236_v4  ;;  %v248_v11 = vld [vmem:[%s217_s11 + $0xa] sm:$0xff]  ;;  %v244_v13 = vmul.f32 %v400_v1, %v237_v10  ;;  %p476_p3 = por %p475_p2, %p474_p1 }
  0x1c   : > { %v254_v8 = vmul.f32 %v401_v2, %v247_v5  ;;  %v255_v14 = vmul.f32 %v401_v2, %v248_v11  ;;  %p470_p0 = pneg %p469_p13 }
  0x1d   : > { %v245_v15 = vadd.f32 %v243_v7, %v232_v6  ;;  %v246_v17 = vadd.f32 %v244_v13, %v233_v12 }
  0x1e   : > { %p477_p5 = pnand %p476_p3, %p470_p0 }
  0x1f   : > { %v256_v18 = vadd.f32 %v254_v8, %v245_v15  ;;  %v257_v19 = vadd.f32 %v255_v14, %v246_v17 }
  0x21   : > { %v265_v20 = vadd.f32 %v402_v16, %v256_v18  ;;  %v266_v21 = vadd.f32 %v402_v16, %v257_v19 }
  0x23   : > { %268 = vst.msk [vmem:[%s209_s21] sm:$0xff] %vm267_vm0, %v265_v20  ;;  %269 = vst.msk [vmem:[%s209_s21 + $0x8] sm:$0xff] %vm267_vm0, %v266_v21 }
  0x24   : > { %480 = shalt.err (!%p477_p5)
}
  0x25   : > { %s481_s26 = scalar_lea.hbm %s649_s30, 256  ;;  %s485_s10 = scalar_lea.hbm %s701_s3, 512 }
  0x26   : > { %p482_p6 = scmp.ne.s32.totalorder %s649_s30, %s481_s26  ;;  %p486_p10 = scmp.lt.s32.totalorder %s649_s30, %s701_s3 }
  0x27   : > { %p487_p11 = scmp.lt.s32.totalorder %s485_s10, %s481_s26 }
  0x28   : > { %p483_p7 = pnand %p482_p6, %p608_p4 }
  0x29   : > { %p488_p12 = por %p487_p11, %p486_p10 }
  0x2a   : > { %p484_p9 = pneg %p483_p7 }
  0x2c   : > { %p489_p13 = pnand %p488_p12, %p484_p9 }
  0x2e   : > { %492 = shalt.err (!%p489_p13)
}
  0x2f   : > { %s546_s19 = smov 128   ;;  %s547_s21 = smov 8  }
  0x30   : > { %410 = dma.vmem_to_hbm [thread:$0]  (%p608_p4), %s644_s23, 256, %s649_s30, %s653_s4, %s546_s19, %s546_s19, %s547_s21  }
  0x31 PF: > { %p416_p0 = scmp.ge.s32.totalorder %s543_s17, 2  ;;  %s300_s27 = sand.u32 1, %s523_s12  }
  0x32   : > { %s301_s28 = scalar_lea.sflag [#allocation3], %s300_s27 }
  0x33   : > { %p413_p1 = pnand %p416_p0, %p615_p8 }
  0x35   : > { %p414_p2 = pneg %p413_p1 }
  0x37   : > { %518 = dma.done.wait (%p414_p2), %s301_s28, 256  }
  0x38   : > { %520 = vsyncadd (%p414_p2), %s301_s28, 4294967040  ;;  %s16_s17 = sadd.s32 1, %s543_s17   ;;  %s704_s12 = smov %s527_s13 }
  0x39   : > { %p13_p3 = scmp.ge.s32.totalorder %s16_s17, 4   ;;  %s705_s13 = smov %s531_s14 }
  0x3a   : > { %s706_s14 = smov %s621_s25  ;;  %s707_s15 = smov %s539_s16 }
  0x3b   : > { %s708_s16 = smov %s710_s20  ;;  %15 = sbr.rel (!%p13_p3) target bundleno = 4 (0x4), region = 73 }
  0x40   :  { %306 = vsyncpa [#allocation3], 1 }
  0x41   :  { %308 = vsyncpa [#allocation3 + $0x1], 1 }

</bundles_post_ra>
